<compile_context>
chip_gen: v7x
topology: tpu7x:2x2x1
jax: 0.10.0
libtpu: 0.0.40
codegen_flags: <defaults>
</compile_context>

<pallas_src>
import functools

import jax
import jax.numpy as jnp
from jax.experimental import pallas as pl
from jax.experimental.pallas import tpu as pltpu


# ---------------------------------------------------------------------------
# Kernel
# ---------------------------------------------------------------------------
def _ca_pool_kernel(x_ref, out_ref, acc_ref, *, hw, tile, acc_lanes, n_chunks,
                    s_inner, needs_mask):
    """Grid = (batch_blocks, p_split, spatial_tiles_per_split).

    x_ref:   (nb, C, tile)        current batch-block, current spatial tile
    out_ref: (1, nb, 1, C)  f32   per-(p, batch-block) partial channel sums
    acc_ref: (nb, C, acc_lanes)   f32 running lane-partial sums (VMEM scratch)
    """
    s = pl.program_id(2)
    gt = pl.program_id(1) * s_inner + s          # global spatial-tile index
    nb, c, _ = acc_ref.shape

    @pl.when(s == 0)
    def _():
        acc_ref[...] = jnp.zeros_like(acc_ref)

    def accumulate(masked):
        # Pure VPU adds of 128-lane chunks into the lane-parallel accumulator.
        def chunk_val(off):
            blk = x_ref[:, :, pl.ds(off, acc_lanes)].astype(jnp.float32)
            if masked:
                lane = jax.lax.broadcasted_iota(jnp.int32, blk.shape, 2)
                pos = gt * tile + off + lane
                blk = jnp.where(pos < hw, blk, 0.0)
            return blk

        if n_chunks == 1:
            acc_ref[...] += chunk_val(0)
        else:
            def body(j, part):
                off = pl.multiple_of(j * acc_lanes, acc_lanes)
                return part + chunk_val(off)

            part = jax.lax.fori_loop(
                0, n_chunks, body,
                jnp.zeros((nb, c, acc_lanes), jnp.float32),
                unroll=min(n_chunks, 8))
            acc_ref[...] += part

    if needs_mask:
        # Only the ragged tail tile(s) pay for the iota/compare/select.
        full_tile = (gt + 1) * tile <= hw

        @pl.when(full_tile)
        def _():
            accumulate(False)

        @pl.when(jnp.logical_not(full_tile))
        def _():
            accumulate(True)
    else:
        accumulate(False)

    # Finalize: single cross-lane reduce + relayout, once per output block.
    @pl.when(s == s_inner - 1)
    def _():
        sums = jnp.sum(acc_ref[...], axis=-1)            # (nb, C)
        out_ref[...] = sums[None, :, None, :].astype(out_ref.dtype)


# ---------------------------------------------------------------------------
# Blocking / tiling heuristics
# ---------------------------------------------------------------------------
def _default_target_bytes():
    """Per-step HBM block byte budget, scaled with the generation's HBM BW."""
    try:
        kind = jax.devices()[0].device_kind.lower()
    except Exception:
        kind = ""
    if "v5" in kind:
        return 2 << 20
    if "v6" in kind or "trillium" in kind:
        return 4 << 20
    if "7" in kind:
        return 6 << 20
    return 4 << 20


def _pick_blocking(n, c, hw, itemsize, target_bytes):
    # Spatial (lane) tile: multiple of 128 sized by the byte budget, or the
    # full extent (always legal, never needs masking).
    if hw <= 128:
        tile = hw
    else:
        lanes = max(128, (target_bytes // max(1, c * itemsize)) // 128 * 128)
        tile = hw if lanes >= hw else lanes
    n_tiles = pl.cdiv(hw, tile)
    needs_mask = (hw % tile) != 0

    # Fold batch into the block while the block stays inside the byte budget
    # (largest divisor of n so the grid is exact — no partial batch blocks).
    per_image = c * tile * itemsize
    nb = 1
    for d in range(n, 0, -1):
        if n % d == 0 and (d == 1 or d * per_image <= target_bytes):
            nb = d
            break
    n_bblocks = n // nb

    # v7x megacore: if batch gives no parallel work, split the spatial axis
    # into two parallel halves (only when it splits exactly, so no block of the
    # grid falls entirely past the padded extent).
    p_split = 2 if (n_bblocks == 1 and n_tiles >= 2 and n_tiles % 2 == 0) else 1
    s_inner = n_tiles // p_split
    return nb, tile, p_split, s_inner, needs_mask


def _x_block_spec(shape, index_map, depth):
    if depth > 2:
        try:
            return pl.BlockSpec(shape, index_map, pipeline_mode=pl.Buffered(depth))
        except Exception:          # pipeline_mode unsupported -> default 2 buffers
            pass
    return pl.BlockSpec(shape, index_map)


# ---------------------------------------------------------------------------
# Wrapper == ChannelwiseAttention.forward
# ---------------------------------------------------------------------------
def channelwise_attention(x, w1, b1, w2, b2, *, expand=True,
                          block_target_bytes=None):
    """ChannelwiseAttention.forward.

    x:  (N, C, H, W)     any float dtype (read in native dtype, f32 accumulation)
    w1: (C//4, C), b1: (C//4,)   linear_1 (PyTorch (out, in) layout)
    w2: (C, C//4), b2: (C,)      linear_2
    expand=True  -> returns (feats broadcast to x.shape, ca_act_reg)  [module parity]
    expand=False -> returns (gates (N, C), ca_act_reg)  [preferred: fuse the mul]
    """
    n, c, h, w = x.shape
    hw = h * w
    x_flat = x.reshape(n, c, hw)
    itemsize = jnp.dtype(x.dtype).itemsize
    target = block_target_bytes or _default_target_bytes()

    nb, tile, p_split, s_inner, needs_mask = _pick_blocking(
        n, c, hw, itemsize, target)
    acc_lanes = 128 if tile % 128 == 0 else tile
    n_chunks = tile // acc_lanes
    n_bblocks = n // nb
    grid = (n_bblocks, p_split, s_inner)

    total_steps = n_bblocks * p_split * s_inner
    depth = 3 if total_steps >= 3 else 2

    # Explicit VMEM budget: input buffers + accumulator + outputs + headroom.
    block_bytes = nb * c * tile * itemsize
    acc_bytes = nb * c * acc_lanes * 4
    needed = depth * block_bytes + acc_bytes + 2 * nb * c * 4 + (1 << 20)
    vmem_limit = int(min(48 << 20, max(16 << 20, needed + (4 << 20))))

    kernel = functools.partial(
        _ca_pool_kernel, hw=hw, tile=tile, acc_lanes=acc_lanes,
        n_chunks=n_chunks, s_inner=s_inner, needs_mask=needs_mask)

    partial_sums = pl.pallas_call(
        kernel,
        out_shape=jax.ShapeDtypeStruct((p_split, n, 1, c), jnp.float32),
        grid_spec=pltpu.PrefetchScalarGridSpec(
            num_scalar_prefetch=0,
            grid=grid,
            in_specs=[
                _x_block_spec((nb, c, tile),
                              lambda b, p, s: (b, 0, p * s_inner + s),
                              depth),
            ],
            out_specs=pl.BlockSpec((1, nb, 1, c), lambda b, p, s: (p, b, 0, 0)),
            scratch_shapes=[pltpu.VMEM((nb, c, acc_lanes), jnp.float32)],
        ),
        compiler_params=pltpu.CompilerParams(
            dimension_semantics=("parallel", "parallel", "arbitrary"),
            vmem_limit_bytes=vmem_limit),
    )(x_flat)

    # Combine partial sums, then the tiny MLP in plain XLA (negligible flops).
    sums = partial_sums.sum(axis=(0, 2))                     # (N, C) f32
    pooled = sums * (1.0 / hw)
    hdn = jax.nn.relu(pooled @ w1.astype(jnp.float32).T + b1.astype(jnp.float32))
    gates = jax.nn.sigmoid(hdn @ w2.astype(jnp.float32).T + b2.astype(jnp.float32))
    ca_act_reg = jnp.mean(gates)

    if not expand:
        return gates, ca_act_reg
    # Module-parity only: consumers should instead fuse x * gates[:, :, None, None].
    feats = jnp.broadcast_to(gates[:, :, None, None], x.shape).astype(x.dtype)
    return feats, ca_act_reg


# ---------------------------------------------------------------------------
# Pure-JAX reference (PyTorch layouts) and self-test
# ---------------------------------------------------------------------------
def _reference(x, w1, b1, w2, b2):
    pooled = jnp.mean(x.astype(jnp.float32), axis=(2, 3))
    hdn = jax.nn.relu(pooled @ w1.T + b1)
    f = jax.nn.sigmoid(hdn @ w2.T + b2)
    reg = jnp.mean(f)
    feats = jnp.broadcast_to(f[:, :, None, None], x.shape)
    return feats, reg


if __name__ == "__main__":
    key = jax.random.PRNGKey(0)
    kx, k1, k2, k3, k4, kx2 = jax.random.split(key, 6)

    # Small shapes consistent with the module: batch=2, channels=8 (C//4 = 2),
    # spatial = 16x16.
    N, C, H, W = 2, 8, 16, 16
    Ch = C // 4

    x = jax.random.normal(kx, (N, C, H, W), dtype=jnp.float32)
    w1 = jax.random.normal(k1, (Ch, C), dtype=jnp.float32) * 0.1
    b1 = jax.random.normal(k2, (Ch,), dtype=jnp.float32) * 0.1
    w2 = jax.random.normal(k3, (C, Ch), dtype=jnp.float32) * 0.1
    b2 = jax.random.normal(k4, (C,), dtype=jnp.float32) * 0.1

    feats, reg = channelwise_attention(x, w1, b1, w2, b2)
    jax.block_until_ready((feats, reg))

    feats_ref, reg_ref = _reference(x, w1, b1, w2, b2)
    assert feats.shape == (N, C, H, W)
    assert jnp.allclose(feats, feats_ref.astype(feats.dtype), atol=1e-5, rtol=1e-5)
    assert jnp.allclose(reg, reg_ref, atol=1e-5, rtol=1e-5)

    # Stress config: bf16 input, ragged spatial extent, forced tiny block budget.
    # Exercises spatial tiling, the masked last tile, the megacore spatial split
    # (p_split = 2), the chunked fori accumulation and the gates-only path.
    x2 = jax.random.normal(kx2, (1, C, 20, 20), dtype=jnp.float32).astype(jnp.bfloat16)
    gates2, reg2 = channelwise_attention(x2, w1, b1, w2, b2, expand=False,
                                         block_target_bytes=4096)
    jax.block_until_ready((gates2, reg2))
    feats2_ref, reg2_ref = _reference(x2, w1, b1, w2, b2)
    gates2_ref = feats2_ref[:, :, 0, 0]
    assert gates2.shape == (1, C)
    assert jnp.allclose(gates2, gates2_ref, atol=1e-5, rtol=1e-5)
    assert jnp.allclose(reg2, reg2_ref, atol=1e-5, rtol=1e-5)

    print("KERNEL_OK")
</pallas_src>

<mosaic_0001>
module attributes {stable_mosaic.version = 11 : i64} {
  func.func @_ca_pool_kernel(%arg0: i32, %arg1: i32, %arg2: i32, %arg3: memref<2x8x256xf32, #tpu.memory_space<vmem>>, %arg4: memref<1x2x1x8xf32, #tpu.memory_space<vmem>>, %arg5: memref<2x8x128xf32, #tpu.memory_space<vmem>>) attributes {dimension_semantics = [#tpu.dimension_semantics<parallel>, #tpu.dimension_semantics<parallel>, #tpu.dimension_semantics<arbitrary>], iteration_bounds = array<i64: 1, 1, 1>, scalar_prefetch = 0 : i64, scratch_operands = 1 : i64, tpu.core_type = #tpu.core_type<tc>, window_params = [{transform_indices = @transform_0, window_bounds = array<i64: 2, 8, 256>}, {transform_indices = @transform_1, window_bounds = array<i64: 1, 2, 1, 8>}]} {
    %c0_i32 = arith.constant 0 : i32
    %0 = arith.cmpi eq, %arg2, %c0_i32 : i32
    %1 = arith.extui %0 : i1 to i32
    %c0_i32_0 = arith.constant 0 : i32
    %2 = arith.cmpi ne, %1, %c0_i32_0 : i32
    scf.if %2 {
      %cst_14 = arith.constant 0.000000e+00 : f32
      %20 = vector.broadcast %cst_14 : f32 to vector<2x8x128xf32>
      %c0_15 = arith.constant 0 : index
      %c0_16 = arith.constant 0 : index
      %c0_17 = arith.constant 0 : index
      %21 = vector.load %arg5[%c0_15, %c0_16, %c0_17] : memref<2x8x128xf32, #tpu.memory_space<vmem>>, vector<2x8x128xf32>
      tpu.vector_store %arg5[%c0_15, %c0_16, %c0_17], %20 {strides = array<i32>} : memref<2x8x128xf32, #tpu.memory_space<vmem>>, vector<2x8x128xf32>,
    } else {
    }
    %cst = arith.constant 0.000000e+00 : f32
    %3 = vector.broadcast %cst : f32 to vector<2x8x128xf32>
    %c0_i32_1 = arith.constant 0 : i32
    %c128_i32 = arith.constant 128 : i32
    %4 = arith.muli %c0_i32_1, %c128_i32 : i32
    %5 = tpu.assume_multiple %4, 128 : i32
    %c0 = arith.constant 0 : index
    %c0_2 = arith.constant 0 : index
    %6 = arith.index_cast %5 : i32 to index
    %7 = vector.load %arg3[%c0, %c0_2, %6] : memref<2x8x256xf32, #tpu.memory_space<vmem>>, vector<2x8x128xf32>
    %8 = arith.addf %3, %7 : vector<2x8x128xf32>
    %c1_i32 = arith.constant 1 : i32
    %c128_i32_3 = arith.constant 128 : i32
    %9 = arith.muli %c1_i32, %c128_i32_3 : i32
    %10 = tpu.assume_multiple %9, 128 : i32
    %c0_4 = arith.constant 0 : index
    %c0_5 = arith.constant 0 : index
    %11 = arith.index_cast %10 : i32 to index
    %12 = vector.load %arg3[%c0_4, %c0_5, %11] : memref<2x8x256xf32, #tpu.memory_space<vmem>>, vector<2x8x128xf32>
    %13 = arith.addf %8, %12 : vector<2x8x128xf32>
    %c2_i32 = arith.constant 2 : i32
    %c0_6 = arith.constant 0 : index
    %c0_7 = arith.constant 0 : index
    %c0_8 = arith.constant 0 : index
    %14 = vector.load %arg5[%c0_6, %c0_7, %c0_8] : memref<2x8x128xf32, #tpu.memory_space<vmem>>, vector<2x8x128xf32>
    %15 = arith.addf %14, %13 : vector<2x8x128xf32>
    %c0_9 = arith.constant 0 : index
    %c0_10 = arith.constant 0 : index
    %c0_11 = arith.constant 0 : index
    %16 = vector.load %arg5[%c0_9, %c0_10, %c0_11] : memref<2x8x128xf32, #tpu.memory_space<vmem>>, vector<2x8x128xf32>
    tpu.vector_store %arg5[%c0_9, %c0_10, %c0_11], %15 {strides = array<i32>} : memref<2x8x128xf32, #tpu.memory_space<vmem>>, vector<2x8x128xf32>,
    %c0_i32_12 = arith.constant 0 : i32
    %17 = arith.cmpi eq, %arg2, %c0_i32_12 : i32
    %18 = arith.extui %17 : i1 to i32
    %c0_i32_13 = arith.constant 0 : i32
    %19 = arith.cmpi ne, %18, %c0_i32_13 : i32
    scf.if %19 {
      %c0_14 = arith.constant 0 : index
      %c0_15 = arith.constant 0 : index
      %c0_16 = arith.constant 0 : index
      %20 = vector.load %arg5[%c0_14, %c0_15, %c0_16] : memref<2x8x128xf32, #tpu.memory_space<vmem>>, vector<2x8x128xf32>
      %cst_17 = arith.constant dense<0.000000e+00> : vector<2x8xf32>
      %21 = vector.multi_reduction <add>, %20, %cst_17 [2] : vector<2x8x128xf32> to vector<2x8xf32>
      %22 = vector.shape_cast %21 : vector<2x8xf32> to vector<1x2x1x8xf32>
      %c0_18 = arith.constant 0 : index
      %c0_19 = arith.constant 0 : index
      %c0_20 = arith.constant 0 : index
      %c0_21 = arith.constant 0 : index
      %23 = vector.load %arg4[%c0_18, %c0_19, %c0_20, %c0_21] : memref<1x2x1x8xf32, #tpu.memory_space<vmem>>, vector<1x2x1x8xf32>
      tpu.vector_store %arg4[%c0_18, %c0_19, %c0_20, %c0_21], %22 {strides = array<i32>} : memref<1x2x1x8xf32, #tpu.memory_space<vmem>>, vector<1x2x1x8xf32>,
    } else {
    }
    return
  }
  func.func @transform_0(%arg0: i32, %arg1: i32, %arg2: i32) -> (i32, i32, i32) {
    %c1_i32 = arith.constant 1 : i32
    %0 = arith.muli %arg1, %c1_i32 : i32
    %1 = arith.addi %0, %arg2 : i32
    %c0_i32 = arith.constant 0 : i32
    %c0_i32_0 = arith.constant 0 : i32
    return %arg0, %c0_i32, %1 : i32, i32, i32
  }
  func.func @transform_1(%arg0: i32, %arg1: i32, %arg2: i32) -> (i32, i32, i32, i32) {
    %c0_i32 = arith.constant 0 : i32
    %c0_i32_0 = arith.constant 0 : i32
    %c0_i32_1 = arith.constant 0 : i32
    return %arg1, %arg0, %c0_i32, %c0_i32_0 : i32, i32, i32, i32
  }
}

</mosaic_0001>

<bundles_post_ra>
// kernel: tpu_custom_call.1
= control target key start
LH: loop header
LB: loop body
LE: loop exit
PB: predicated region body
PF: predicated region fallthrough
CT: control target
= control target key end

     0   :  { %6 = vsyncpa [#allocation4], 0  ;;  %s188_s0 = inlined_call_operand.hbm [shape: f32[2,8,256], index: 0, kind: input, shape index: {}]   ;;  %s189_s1 = inlined_call_operand.hbm [shape: f32[1,2,1,8], index: 1, kind: output, shape index: {}]  }
   0x1   :  { %7 = vsyncpa [#allocation5], 0  ;;  %s146_s6 = smov [#allocation3]   ;;  %s98_s10 = scalar_lea.hbm %s188_s0, 512 }
   0x2   :  { %s17_s7 = sshll.u32 %s146_s6, 4  ;;  %p99_p0 = scmp.ne.s32.totalorder %s188_s0, %s98_s10  ;;  %s18_s7 = int_to_ptr.vmem [resolvable:$true] %s17_s7 }
   0x3   :  { %p102_p1 = scmp.lt.u32.totalorder %s98_s10, %s188_s0 }
   0x5   :  { %p104_p2 = pnand %p102_p1, %p99_p0 }
   0x7   :  { %107 = shalt.err (!%p104_p2)
}
   0x8   :  { %s108_s15 = scalar_lea.vmem %s18_s7, 512  ;;  %p113_p4 = scmp.lt.s32.totalorder %s18_s7, %s18_s7 }
   0x9   :  { %p109_p3 = scmp.ne.s32.totalorder %s18_s7, %s108_s15  ;;  %p114_p5 = scmp.lt.s32.totalorder %s108_s15, %s108_s15 }
   0xb   :  { %p115_p6 = por %p114_p5, %p113_p4 }
   0xd   :  { %p116_p7 = pnand %p115_p6, %p109_p3 }
   0xf   :  { %119 = shalt.err (!%p116_p7)
}
  0x10   :  { %s147_s16 = smov 256   ;;  %s148_s17 = smov 16  }
  0x11   :  { %23 = dma.hbm_to_vmem [thread:$0]  %s188_s0, 512, %s18_s7, [#allocation4], %s147_s16, %s147_s16, %s148_s17  }
  0x12   :  { %142 = dma.done.wait [#allocation4], 512  }
  0x13   :  { %143 = vsyncadd [#allocation4], 4294966784  ;;  %v35_v0 = vld [vmem:[#allocation3] sm:$0xff]  ;;  %v40_v1 = vld [vmem:[#allocation3 + $0x8] sm:$0xff]  ;;  %v61_v6 = vlaneseq  ;;  %vm73_vm0 = vcmask 57344   ;;  %s149_s20 = smov [#allocation6]  }
  0x14   :  { %v36_v2 = vld [vmem:[#allocation3 + $0x10] sm:$0xff]  ;;  %v42_v3 = vadd.f32 %v40_v1, %v35_v0  ;;  %v41_v4 = vld [vmem:[#allocation3 + $0x18] sm:$0xff]  ;;  %s81_s21 = sshll.u32 %s149_s20, 4  ;;  %s82_s21 = int_to_ptr.vmem [resolvable:$true] %s81_s21 }
  0x15   :  { %v43_v5 = vadd.f32 %v41_v4, %v36_v2  ;;  %v62_v7 = vand.u32 127, %v61_v6  ;;  %v64_v8 = vshrl.u32 %v61_v6, 7  ;;  %s120_s0 = scalar_lea.vmem %s82_s21, 32  ;;  %p125_p9 = scmp.lt.s32.totalorder %s82_s21, %s82_s21 }
  0x16   :  { %55 = vadd.xlane.f32.xlu0 %v42_v3  ;;  %p121_p8 = scmp.ne.s32.totalorder %s82_s21, %s120_s0  ;;  %p126_p10 = scmp.lt.s32.totalorder %s120_s0, %s120_s0 }
  0x17   :  { %v65_v9 = vsub.s32 %v62_v7, %v64_v8 }
  0x18   :  { %p127_p11 = por %p126_p10, %p125_p9 }
  0x1a   :  { %57 = vadd.xlane.f32.xlu0 %v43_v5  ;;  %p128_p12 = pnand %p127_p11, %p121_p8 }
  0xa3   :  { %v56_v10 = vpop.xlane.xlu0 %55 }
  0xa4   :  { %v66_v11 = vrot.slane %v56_v10, %v65_v9 }
  0xa6   :  { %74 = vst.msk [vmem:[#allocation6] sm:$0x1] %vm73_vm0, %v66_v11 }
  0xa7   :  { %v58_v12 = vpop.xlane.xlu0 %57 }
  0xa8   :  { %v70_v13 = vrot.slane %v58_v12, %v65_v9 }
  0xaa   :  { %75 = vst.msk [vmem:[#allocation6 + $0x1] sm:$0x1] %vm73_vm0, %v70_v13 }
  0xab   :  { %131 = shalt.err (!%p128_p12)
}
  0xac   :  { %s132_s24 = scalar_lea.hbm %s189_s1, 32 }
  0xad   :  { %p133_p13 = scmp.ne.s32.totalorder %s189_s1, %s132_s24  ;;  %p136_p0 = scmp.lt.u32.totalorder %s132_s24, %s189_s1 }
  0xaf   :  { %p138_p1 = pnand %p136_p0, %p133_p13 }
  0xb1   :  { %141 = shalt.err (!%p138_p1)
}
  0xb2   :  { %s150_s29 = smov 1  }
  0xb3   :  { %87 = dma.vmem_to_hbm [thread:$0]  %s82_s21, 32, %s189_s1, [#allocation5], %s148_s17, %s148_s17, %s150_s29  }
  0xb4   :  { %144 = dma.done.wait [#allocation5], 32  }
  0xb5   :  { %145 = vsyncadd [#allocation5], 4294967264 }
  0xb6   :  { %91 = vsyncpa [#allocation4], 1 }
  0xb7   :  { %92 = vsyncpa [#allocation5], 1 }

</bundles_post_ra>
